<compile_context>
chip_gen: v7x
topology: tpu7x:2x2x1
jax: 0.10.0
libtpu: 0.0.40
codegen_flags: <defaults>
</compile_context>

<pallas_src>
import jax
import jax.numpy as jnp
from jax.experimental import pallas as pl
from jax.experimental.pallas import tpu as pltpu

# ---------------- deterministic objective hyper-parameters ----------------
T_BARRIER = 50.0    # log-barrier parameter t  (1/t**2 = 4e-4 < epsilon = 1e-3)
ZETA = 1.0          # barrier weight   (regu_A.zeta)
DELTA = 0.1         # sparsity weight  (regu_A.delta)
MU = 1.0            # smoothness weight (regu_E)
SPOQ_P = 0.25
SPOQ_Q = 2.0
SPOQ_ALPHA = 7e-7
SPOQ_BETA = 3e-3
SPOQ_ETA = 0.1


def objective_kernel(a_ref, at_ref, e_ref, g_ref, y_ref, out_ref):
    """Per-tile evaluation of the unmixing objective with in-kernel accumulation.

    a_ref:  (TM, P)  abundance tile (matmul layout)          (VMEM)
    at_ref: (P, TM)  same abundances, lane-dense layout      (VMEM)
    e_ref:  (P,  S)  endmember spectra (resident)            (VMEM)
    g_ref:  (P,  P)  Gram matrix of dE = E[:,1:]-E[:,:-1]    (VMEM)
    y_ref:  (TM, S)  target tile                             (VMEM)
    out_ref:(1,  4)  SMEM accumulator [RE, barrier, spoq, smooth]
    """
    i = pl.program_id(0)

    @pl.when(i == 0)
    def _():
        out_ref[0, 0] = jnp.float32(0.0)
        out_ref[0, 1] = jnp.float32(0.0)
        out_ref[0, 2] = jnp.float32(0.0)
        out_ref[0, 3] = jnp.float32(0.0)

    A = a_ref[...]        # (TM, P)
    At = at_ref[...]      # (P, TM)  -- pixels along the 128-lane axis
    E = e_ref[...]        # (P, S)
    G = g_ref[...]        # (P, P)
    Y = y_ref[...]        # (TM, S)

    # --- reconstruction error: 0.5 * ||A E - Y||_F^2 (MXU + lane-dense diff) ---
    pred = jnp.dot(A, E, preferred_element_type=jnp.float32)      # (TM, S)
    diff = pred - Y
    re = 0.5 * jnp.sum(diff * diff)

    # --- log-barrier extension enforcing A >= 0 (constraint u = -A <= 0) ---
    # Evaluated on the lane-dense transposed tile (same element set).
    t = T_BARRIER
    u = -At
    thr = -1.0 / (t * t)
    log_branch = -(1.0 / t) * jnp.log(jnp.maximum(-u, 1e-30))
    lin_branch = t * u - (1.0 / t) * jnp.log(1.0 / (t * t)) + 1.0 / t
    barrier = jnp.sum(jnp.where(u <= thr, log_branch, lin_branch))

    # --- SPOQ (smoothed p-over-q) sparsity, per pixel (column of At) ---
    # p = 1/4, q = 2:
    #   (A^2 + alpha^2)^(p/2) = eighth root -> three chained sqrts
    #   log((x)^(1/p)) = (1/p) log(x);  |A|^q = A^2
    a2 = At * At                                                   # (P, TM)
    root8 = jnp.sqrt(jnp.sqrt(jnp.sqrt(a2 + SPOQ_ALPHA * SPOQ_ALPHA)))
    lp_p = jnp.sum(root8 - SPOQ_ALPHA ** SPOQ_P, axis=0, keepdims=True)   # (1, TM)
    l2 = jnp.sum(a2, axis=0, keepdims=True)                               # (1, TM)
    spoq_rows = ((1.0 / SPOQ_P) * jnp.log(lp_p + SPOQ_BETA ** SPOQ_P)
                 - (1.0 / SPOQ_Q) * jnp.log(SPOQ_ETA ** SPOQ_Q + l2))
    spoq = jnp.sum(spoq_rows)

    # --- spectral smoothness of the prediction (regu_E) ---
    # ||A dE||_F^2 = trace(A (dE dE^T) A^T) = sum(G * (A^T A))
    AtA = jnp.dot(At, A, preferred_element_type=jnp.float32)      # (P, P)
    smooth = jnp.sum(G * AtA)

    out_ref[0, 0] = out_ref[0, 0] + re
    out_ref[0, 1] = out_ref[0, 1] + barrier
    out_ref[0, 2] = out_ref[0, 2] + spoq
    out_ref[0, 3] = out_ref[0, 3] + smooth


def objective_forward(A, E, Y, *, tile_m=512):
    """AutogradDescent.forward(): evaluate the objective at the current state."""
    NM, P = A.shape
    _, S = E.shape
    tile_m = min(tile_m, NM)
    if tile_m < NM:
        # (P, tile_m) block needs a lane-aligned last dim; (tile_m, *) needs %8.
        assert tile_m % 128 == 0, "tile_m must be a multiple of 128"
        assert NM % tile_m == 0, "ragged pixel count not supported"  # TODO(synk): mask last tile
    num_tiles = NM // tile_m

    At = jnp.transpose(A)                       # (P, NM) lane-dense layout
    dE = E[:, 1:] - E[:, :-1]                   # (P, S-1)
    G = dE @ dE.T                               # (P, P) Gram of spectral diffs

    partials = pl.pallas_call(
        objective_kernel,
        out_shape=jax.ShapeDtypeStruct((1, 4), jnp.float32),
        grid_spec=pltpu.PrefetchScalarGridSpec(
            num_scalar_prefetch=0,
            grid=(num_tiles,),
            in_specs=[
                pl.BlockSpec((tile_m, P), lambda i: (i, 0)),   # A
                pl.BlockSpec((P, tile_m), lambda i: (0, i)),   # A^T
                pl.BlockSpec((P, S), lambda i: (0, 0)),        # E (resident)
                pl.BlockSpec((P, P), lambda i: (0, 0)),        # G (resident)
                pl.BlockSpec((tile_m, S), lambda i: (i, 0)),   # Y
            ],
            out_specs=pl.BlockSpec((1, 4), lambda i: (0, 0),
                                   memory_space=pltpu.MemorySpace.SMEM),
        ),
        compiler_params=pltpu.CompilerParams(
            dimension_semantics=("arbitrary",),
            vmem_limit_bytes=32 * 1024 * 1024),
    )(A, At, E, G, Y)

    re = partials[0, 0]
    barrier = partials[0, 1]
    spoq = partials[0, 2]
    smooth = partials[0, 3]
    loss = re + ZETA * barrier + DELTA * spoq + MU * smooth
    return loss, (re, barrier, spoq, smooth)


def objective_reference(A, E, Y):
    """Pure-JAX reference (original, un-simplified formulas) for correctness."""
    pred = A @ E
    re = 0.5 * jnp.sum((pred - Y) ** 2)
    t = T_BARRIER
    u = -A
    thr = -1.0 / (t * t)
    log_branch = -(1.0 / t) * jnp.log(jnp.maximum(-u, 1e-30))
    lin_branch = t * u - (1.0 / t) * jnp.log(1.0 / (t * t)) + 1.0 / t
    barrier = jnp.sum(jnp.where(u <= thr, log_branch, lin_branch))
    p, q = SPOQ_P, SPOQ_Q
    alpha, beta, eta = SPOQ_ALPHA, SPOQ_BETA, SPOQ_ETA
    lp_p = jnp.sum((A * A + alpha * alpha) ** (p / 2.0) - alpha ** p,
                   axis=1, keepdims=True)
    numer = (lp_p + beta ** p) ** (1.0 / p)
    denom = (eta ** q + jnp.sum(jnp.abs(A) ** q, axis=1, keepdims=True)) ** (1.0 / q)
    spoq = jnp.sum(jnp.log(numer) - jnp.log(denom))
    d = pred[:, 1:] - pred[:, :-1]
    smooth = jnp.sum(d * d)
    return re + ZETA * barrier + DELTA * spoq + MU * smooth


if __name__ == "__main__":
    # Small shapes consistent with a hyperspectral image target of size (N, M, S)
    N, M, S, P = 32, 32, 32, 4        # 1024 pixels, 32 bands, 4 endmembers
    key = jax.random.PRNGKey(0)
    kA, kE, kY = jax.random.split(key, 3)

    # Deterministic "parameters" of the objective: abundances A and spectra E.
    A_raw = jax.random.uniform(kA, (N * M, P), dtype=jnp.float32)
    A = A_raw / jnp.sum(A_raw, axis=1, keepdims=True)      # nonneg, sum-to-one
    E = jax.random.uniform(kE, (P, S), dtype=jnp.float32)  # nonneg spectra
    target = jax.random.uniform(kY, (N, M, S), dtype=jnp.float32)
    Y = target.reshape(N * M, S)

    loss, (re, barrier, spoq, smooth) = objective_forward(A, E, Y, tile_m=256)
    loss = jax.block_until_ready(loss)

    ref = objective_reference(A, E, Y)
    assert jnp.isfinite(loss)
    assert jnp.allclose(loss, ref, rtol=5e-4, atol=1e-3), (loss, ref)

    print("KERNEL_OK")
</pallas_src>

<mosaic_0001>
module attributes {stable_mosaic.version = 11 : i64} {
  func.func @objective_kernel(%arg0: i32, %arg1: memref<256x4xf32, #tpu.memory_space<vmem>>, %arg2: memref<4x256xf32, #tpu.memory_space<vmem>>, %arg3: memref<4x32xf32, #tpu.memory_space<vmem>>, %arg4: memref<4x4xf32, #tpu.memory_space<vmem>>, %arg5: memref<256x32xf32, #tpu.memory_space<vmem>>, %arg6: memref<1x4xf32, #tpu.memory_space<smem>>) attributes {dimension_semantics = [#tpu.dimension_semantics<arbitrary>], iteration_bounds = array<i64: 4>, scalar_prefetch = 0 : i64, scratch_operands = 0 : i64, tpu.core_type = #tpu.core_type<tc>, window_params = [{transform_indices = @transform_0, window_bounds = array<i64: 256, 4>}, {transform_indices = @transform_1, window_bounds = array<i64: 4, 256>}, {pipeline_mode = #tpu.pipeline_mode<synchronous>, transform_indices = @transform_2, window_bounds = array<i64: 4, 32>}, {pipeline_mode = #tpu.pipeline_mode<synchronous>, transform_indices = @transform_3, window_bounds = array<i64: 4, 4>}, {transform_indices = @transform_4, window_bounds = array<i64: 256, 32>}, {transform_indices = @transform_5, window_bounds = array<i64: 1, 4>}]} {
    %c0_i32 = arith.constant 0 : i32
    %0 = arith.cmpi eq, %arg0, %c0_i32 : i32
    %1 = arith.extui %0 : i1 to i32
    %c0_i32_0 = arith.constant 0 : i32
    %2 = arith.cmpi ne, %1, %c0_i32_0 : i32
    scf.if %2 {
      %cst_46 = arith.constant 0.000000e+00 : f32
      %c0_47 = arith.constant 0 : index
      %c0_48 = arith.constant 0 : index
      %85 = memref.load %arg6[%c0_47, %c0_48] : memref<1x4xf32, #tpu.memory_space<smem>>
      memref.store %cst_46, %arg6[%c0_47, %c0_48] : memref<1x4xf32, #tpu.memory_space<smem>>
      %cst_49 = arith.constant 0.000000e+00 : f32
      %c0_50 = arith.constant 0 : index
      %c1_51 = arith.constant 1 : index
      %86 = memref.load %arg6[%c0_50, %c1_51] : memref<1x4xf32, #tpu.memory_space<smem>>
      memref.store %cst_49, %arg6[%c0_50, %c1_51] : memref<1x4xf32, #tpu.memory_space<smem>>
      %cst_52 = arith.constant 0.000000e+00 : f32
      %c0_53 = arith.constant 0 : index
      %c2_54 = arith.constant 2 : index
      %87 = memref.load %arg6[%c0_53, %c2_54] : memref<1x4xf32, #tpu.memory_space<smem>>
      memref.store %cst_52, %arg6[%c0_53, %c2_54] : memref<1x4xf32, #tpu.memory_space<smem>>
      %cst_55 = arith.constant 0.000000e+00 : f32
      %c0_56 = arith.constant 0 : index
      %c3_57 = arith.constant 3 : index
      %88 = memref.load %arg6[%c0_56, %c3_57] : memref<1x4xf32, #tpu.memory_space<smem>>
      memref.store %cst_55, %arg6[%c0_56, %c3_57] : memref<1x4xf32, #tpu.memory_space<smem>>
    } else {
    }
    %c0 = arith.constant 0 : index
    %c0_1 = arith.constant 0 : index
    %3 = vector.load %arg1[%c0, %c0_1] : memref<256x4xf32, #tpu.memory_space<vmem>>, vector<256x4xf32>
    %c0_2 = arith.constant 0 : index
    %c0_3 = arith.constant 0 : index
    %4 = vector.load %arg2[%c0_2, %c0_3] : memref<4x256xf32, #tpu.memory_space<vmem>>, vector<4x256xf32>
    %c0_4 = arith.constant 0 : index
    %c0_5 = arith.constant 0 : index
    %5 = vector.load %arg3[%c0_4, %c0_5] : memref<4x32xf32, #tpu.memory_space<vmem>>, vector<4x32xf32>
    %c0_6 = arith.constant 0 : index
    %c0_7 = arith.constant 0 : index
    %6 = vector.load %arg4[%c0_6, %c0_7] : memref<4x4xf32, #tpu.memory_space<vmem>>, vector<4x4xf32>
    %c0_8 = arith.constant 0 : index
    %c0_9 = arith.constant 0 : index
    %7 = vector.load %arg5[%c0_8, %c0_9] : memref<256x32xf32, #tpu.memory_space<vmem>>, vector<256x32xf32>
    %cst = arith.constant dense<0.000000e+00> : vector<256x32xf32>
    %8 = tpu.matmul %3, %5, %cst {dimension_numbers = #tpu.dot_dimension_numbers<[1], [0], [0], [1], [0, 0, 1, 1], [], []>} : vector<256x4xf32>, vector<4x32xf32>, vector<256x32xf32> -> vector<256x32xf32>
    %9 = arith.subf %8, %7 : vector<256x32xf32>
    %10 = arith.mulf %9, %9 : vector<256x32xf32>
    %11 = vector.shape_cast %10 : vector<256x32xf32> to vector<1x256x32xf32>
    %cst_10 = arith.constant dense<0.000000e+00> : vector<1xf32>
    %12 = vector.multi_reduction <add>, %11, %cst_10 [1, 2] : vector<1x256x32xf32> to vector<1xf32>
    %13 = vector.shape_cast %12 : vector<1xf32> to vector<1x1x1xf32>
    %14 = vector.extract %13[0, 0, 0] : f32 from vector<1x1x1xf32>
    %cst_11 = arith.constant 5.000000e-01 : f32
    %15 = arith.mulf %cst_11, %14 : f32
    %cst_12 = arith.constant 0.000000e+00 : f32
    %16 = vector.broadcast %cst_12 : f32 to vector<4x256xf32>
    %17 = arith.subf %16, %4 : vector<4x256xf32>
    %cst_13 = arith.constant 0.000000e+00 : f32
    %18 = vector.broadcast %cst_13 : f32 to vector<4x256xf32>
    %19 = arith.subf %18, %17 : vector<4x256xf32>
    %cst_14 = arith.constant 1.000000e-30 : f32
    %20 = vector.broadcast %cst_14 : f32 to vector<4x256xf32>
    %21 = arith.maximumf %19, %20 : vector<4x256xf32>
    %22 = math.log %21 : vector<4x256xf32>
    %cst_15 = arith.constant -2.000000e-02 : f32
    %23 = vector.broadcast %cst_15 : f32 to vector<4x256xf32>
    %24 = arith.mulf %23, %22 : vector<4x256xf32>
    %cst_16 = arith.constant 5.000000e+01 : f32
    %25 = vector.broadcast %cst_16 : f32 to vector<4x256xf32>
    %26 = arith.mulf %25, %17 : vector<4x256xf32>
    %cst_17 = arith.constant 4.000000e-04 : f32
    %27 = math.log %cst_17 : f32
    %cst_18 = arith.constant 2.000000e-02 : f32
    %28 = arith.mulf %cst_18, %27 : f32
    %29 = vector.broadcast %28 : f32 to vector<4x256xf32>
    %30 = arith.subf %26, %29 : vector<4x256xf32>
    %cst_19 = arith.constant 2.000000e-02 : f32
    %31 = vector.broadcast %cst_19 : f32 to vector<4x256xf32>
    %32 = arith.addf %30, %31 : vector<4x256xf32>
    %cst_20 = arith.constant -4.000000e-04 : f32
    %33 = vector.broadcast %cst_20 : f32 to vector<4x256xf32>
    %34 = arith.cmpf ole, %17, %33 : vector<4x256xf32>
    %35 = arith.select %34, %24, %32 : vector<4x256xi1>, vector<4x256xf32>
    %36 = vector.shape_cast %35 : vector<4x256xf32> to vector<1x4x256xf32>
    %cst_21 = arith.constant dense<0.000000e+00> : vector<1xf32>
    %37 = vector.multi_reduction <add>, %36, %cst_21 [1, 2] : vector<1x4x256xf32> to vector<1xf32>
    %38 = vector.shape_cast %37 : vector<1xf32> to vector<1x1x1xf32>
    %39 = vector.extract %38[0, 0, 0] : f32 from vector<1x1x1xf32>
    %40 = arith.mulf %4, %4 : vector<4x256xf32>
    %cst_22 = arith.constant 4.900000e-13 : f32
    %41 = vector.broadcast %cst_22 : f32 to vector<4x256xf32>
    %42 = arith.addf %40, %41 : vector<4x256xf32>
    %43 = math.sqrt %42 : vector<4x256xf32>
    %44 = math.sqrt %43 : vector<4x256xf32>
    %45 = math.sqrt %44 : vector<4x256xf32>
    %cst_23 = arith.constant 0.0289250761 : f32
    %46 = vector.broadcast %cst_23 : f32 to vector<4x256xf32>
    %47 = arith.subf %45, %46 : vector<4x256xf32>
    %cst_24 = arith.constant dense<0.000000e+00> : vector<256xf32>
    %48 = vector.multi_reduction <add>, %47, %cst_24 [0] : vector<4x256xf32> to vector<256xf32>
    %49 = vector.shape_cast %48 : vector<256xf32> to vector<1x256xf32>
    %cst_25 = arith.constant dense<0.000000e+00> : vector<256xf32>
    %50 = vector.multi_reduction <add>, %40, %cst_25 [0] : vector<4x256xf32> to vector<256xf32>
    %51 = vector.shape_cast %50 : vector<256xf32> to vector<1x256xf32>
    %cst_26 = arith.constant 0.234034732 : f32
    %52 = vector.broadcast %cst_26 : f32 to vector<1x256xf32>
    %53 = arith.addf %49, %52 : vector<1x256xf32>
    %54 = math.log %53 : vector<1x256xf32>
    %cst_27 = arith.constant 4.000000e+00 : f32
    %55 = vector.broadcast %cst_27 : f32 to vector<1x256xf32>
    %56 = arith.mulf %55, %54 : vector<1x256xf32>
    %cst_28 = arith.constant 0.00999999977 : f32
    %57 = vector.broadcast %cst_28 : f32 to vector<1x256xf32>
    %58 = arith.addf %57, %51 : vector<1x256xf32>
    %59 = math.log %58 : vector<1x256xf32>
    %cst_29 = arith.constant 5.000000e-01 : f32
    %60 = vector.broadcast %cst_29 : f32 to vector<1x256xf32>
    %61 = arith.mulf %60, %59 : vector<1x256xf32>
    %62 = arith.subf %56, %61 : vector<1x256xf32>
    %63 = vector.shape_cast %62 : vector<1x256xf32> to vector<1x1x256xf32>
    %cst_30 = arith.constant dense<0.000000e+00> : vector<1xf32>
    %64 = vector.multi_reduction <add>, %63, %cst_30 [1, 2] : vector<1x1x256xf32> to vector<1xf32>
    %65 = vector.shape_cast %64 : vector<1xf32> to vector<1x1x1xf32>
    %66 = vector.extract %65[0, 0, 0] : f32 from vector<1x1x1xf32>
    %cst_31 = arith.constant dense<0.000000e+00> : vector<4x4xf32>
    %67 = tpu.matmul %4, %3, %cst_31 {dimension_numbers = #tpu.dot_dimension_numbers<[1], [0], [0], [1], [0, 0, 1, 1], [], []>} : vector<4x256xf32>, vector<256x4xf32>, vector<4x4xf32> -> vector<4x4xf32>
    %68 = arith.mulf %6, %67 : vector<4x4xf32>
    %69 = vector.shape_cast %68 : vector<4x4xf32> to vector<1x4x4xf32>
    %cst_32 = arith.constant dense<0.000000e+00> : vector<1xf32>
    %70 = vector.multi_reduction <add>, %69, %cst_32 [1, 2] : vector<1x4x4xf32> to vector<1xf32>
    %71 = vector.shape_cast %70 : vector<1xf32> to vector<1x1x1xf32>
    %72 = vector.extract %71[0, 0, 0] : f32 from vector<1x1x1xf32>
    %c0_33 = arith.constant 0 : index
    %c0_34 = arith.constant 0 : index
    %73 = memref.load %arg6[%c0_33, %c0_34] : memref<1x4xf32, #tpu.memory_space<smem>>
    %74 = arith.addf %73, %15 : f32
    %c0_35 = arith.constant 0 : index
    %c0_36 = arith.constant 0 : index
    %75 = memref.load %arg6[%c0_35, %c0_36] : memref<1x4xf32, #tpu.memory_space<smem>>
    memref.store %74, %arg6[%c0_35, %c0_36] : memref<1x4xf32, #tpu.memory_space<smem>>
    %c0_37 = arith.constant 0 : index
    %c1 = arith.constant 1 : index
    %76 = memref.load %arg6[%c0_37, %c1] : memref<1x4xf32, #tpu.memory_space<smem>>
    %77 = arith.addf %76, %39 : f32
    %c0_38 = arith.constant 0 : index
    %c1_39 = arith.constant 1 : index
    %78 = memref.load %arg6[%c0_38, %c1_39] : memref<1x4xf32, #tpu.memory_space<smem>>
    memref.store %77, %arg6[%c0_38, %c1_39] : memref<1x4xf32, #tpu.memory_space<smem>>
    %c0_40 = arith.constant 0 : index
    %c2 = arith.constant 2 : index
    %79 = memref.load %arg6[%c0_40, %c2] : memref<1x4xf32, #tpu.memory_space<smem>>
    %80 = arith.addf %79, %66 : f32
    %c0_41 = arith.constant 0 : index
    %c2_42 = arith.constant 2 : index
    %81 = memref.load %arg6[%c0_41, %c2_42] : memref<1x4xf32, #tpu.memory_space<smem>>
    memref.store %80, %arg6[%c0_41, %c2_42] : memref<1x4xf32, #tpu.memory_space<smem>>
    %c0_43 = arith.constant 0 : index
    %c3 = arith.constant 3 : index
    %82 = memref.load %arg6[%c0_43, %c3] : memref<1x4xf32, #tpu.memory_space<smem>>
    %83 = arith.addf %82, %72 : f32
    %c0_44 = arith.constant 0 : index
    %c3_45 = arith.constant 3 : index
    %84 = memref.load %arg6[%c0_44, %c3_45] : memref<1x4xf32, #tpu.memory_space<smem>>
    memref.store %83, %arg6[%c0_44, %c3_45] : memref<1x4xf32, #tpu.memory_space<smem>>
    return
  }
  func.func @transform_0(%arg0: i32) -> (i32, i32) {
    %c0_i32 = arith.constant 0 : i32
    %c0_i32_0 = arith.constant 0 : i32
    return %arg0, %c0_i32 : i32, i32
  }
  func.func @transform_1(%arg0: i32) -> (i32, i32) {
    %c0_i32 = arith.constant 0 : i32
    %c0_i32_0 = arith.constant 0 : i32
    return %c0_i32, %arg0 : i32, i32
  }
  func.func @transform_2(%arg0: i32) -> (i32, i32) {
    %c0_i32 = arith.constant 0 : i32
    %c0_i32_0 = arith.constant 0 : i32
    %c0_i32_1 = arith.constant 0 : i32
    return %c0_i32, %c0_i32_0 : i32, i32
  }
  func.func @transform_3(%arg0: i32) -> (i32, i32) {
    %c0_i32 = arith.constant 0 : i32
    %c0_i32_0 = arith.constant 0 : i32
    %c0_i32_1 = arith.constant 0 : i32
    return %c0_i32, %c0_i32_0 : i32, i32
  }
  func.func @transform_4(%arg0: i32) -> (i32, i32) {
    %c0_i32 = arith.constant 0 : i32
    %c0_i32_0 = arith.constant 0 : i32
    return %arg0, %c0_i32 : i32, i32
  }
  func.func @transform_5(%arg0: i32) -> (i32, i32) {
    %c0_i32 = arith.constant 0 : i32
    %c0_i32_0 = arith.constant 0 : i32
    %c0_i32_1 = arith.constant 0 : i32
    return %c0_i32, %c0_i32_0 : i32, i32
  }
}

</mosaic_0001>

<bundles_post_ra>
// kernel: tpu_custom_call.1
= control target key start
LH: loop header
LB: loop body
LE: loop exit
PB: predicated region body
PF: predicated region fallthrough
CT: control target
= control target key end

     0   :  { %10 = vsyncpa [#allocation3], 0  ;;  %s1391_s18 = smov 0   ;;  %s1619_s0 = inlined_call_operand.vmem [shape: f32[1024,4], index: 0, kind: input, shape index: {}]   ;;  %s1620_s1 = inlined_call_operand.vmem [shape: f32[4,1024], index: 1, kind: input, shape index: {}]   ;;  %s1621_s2 = inlined_call_operand.vmem [shape: f32[4,32], index: 2, kind: input, shape index: {}]   ;;  %s1622_s3 = inlined_call_operand.vmem [shape: f32[4,4], index: 3, kind: input, shape index: {}]   ;;  %s1623_s4 = inlined_call_operand.vmem [shape: f32[1024,32], index: 4, kind: input, shape index: {}]   ;;  %s1624_s5 = inlined_call_operand.hbm [shape: f32[1,4], index: 5, kind: output, shape index: {}]  }
   0x1 LB: > { %s1397_s19 = sadd.s32 4294967295, %s1357_s18   ;;  %p1088_p0 = scmp.ge.s32.totalorder %s1357_s18, 1  ;;  %s1357_s18 = sphi %s1391_s18, %s16_s18  }
   0x2   : > { %p206_p1 = scmp.lt.s32.totalorder %s1357_s18, 5 }
   0x4   : > { %p207_p2 = pnand %p1088_p0, %p206_p1 }
   0x5   : > { %v302_v0 = vld [vmem:[%s1621_s2] sm:$0xf] (!%p207_p2)  ;;  %vm433_vm0 = vcmask (!%p207_p2), 1043456   ;;  %s1089_s22 = sshll.u32 (!%p207_p2), %s1397_s19, 5  ;;  %s1091_s23 = sshll.u32 (!%p207_p2), %s1397_s19, 1  ;;  %vm336_vm1 = vcmask (!%p207_p2), 31744  }
   0x6   : > { %210 = sbr.rel (%p207_p2) target bundleno = 522 (0x20a), region = 40  ;;  %1206 = vmatprep.subr.msk.mxu0 (!%p207_p2), %vm433_vm0, %v302_v0  ;;  %p240_p3 = scmp.lt.s32.totalorder (!%p207_p2), %s1089_s22, 127  ;;  %vm902_vm8 = vcmask (!%p207_p2), 1040384   ;;  %vm726_vm9 = vcmask (!%p207_p2), 261120   ;;  %vm989_vm10 = vcmask (!%p207_p2), 27648  }
   0x7   : > { %1207 = vmatpush3.msk.msra.mxu0 (!%p207_p2), %vm433_vm0, %v302_v0  ;;  %p246_p4 = scmp.lt.s32.totalorder (!%p207_p2), %s1091_s23, 7  ;;  %p1305_p5 = scmp.eq.s32.totalorder (!%p207_p2), %s1397_s19, 0 }
   0x8   : > { %s1359_s12 = smov (!%p207_p2), 0.0   ;;  %p1306_p6 = scmp.eq.s32.totalorder (!%p207_p2), %s1397_s19, 3 }
   0x9   : > { %s1335_s30 = scalar_lea.hbm (!%p207_p2), %s1624_s5, 16 }
   0xa   : > { %p1336_p7 = scmp.ne.s32.totalorder (!%p207_p2), %s1624_s5, %s1335_s30  ;;  %p1341_p10 = scmp.lt.u32.totalorder (!%p207_p2), %s1335_s30, %s1624_s5 }
   0xc   : > { %p1337_p8 = pnand (!%p207_p2), %p1336_p7, %p1306_p6 }
   0xd   : > { %s1626_s22 = smov (!%p240_p3, %s1089_s22), 127  ;;  %s1628_s23 = smov (!%p246_p4, %s1091_s23), 7 }
   0xe   : > { %s1090_s24 = sshll.u32 %s1626_s22, 3  ;;  %s1092_s28 = sshll.u32 %s1628_s23, 2 }
   0xf   : > { %s1416_s27 = scalar_lea.vmem %s1619_s0, %s1090_s24  ;;  %s249_s6 = scalar_lea.vmem %s1620_s1, %s1092_s28 }
  0x10   : > { %v269_v1 = vld [vmem:[%s1416_s27] sm:$0xff]  ;;  %v270_v2 = vld [vmem:[%s1416_s27 + $0x8] sm:$0xff]  ;;  %v271_v3 = vld [vmem:[%s1416_s27 + $0x10] sm:$0xff]  ;;  %s1525_s9 = scalar_lea.vmem %s1623_s4, %s1090_s24  ;;  %1297 = sst [smem:[#allocation2]] (%p1305_p5), %s1359_s12 }
  0x11   : > { %1208 = vmatprep.mubr.msk.f32.mxu0 %vm336_vm1, %v269_v1  ;;  %v272_v4 = vld [vmem:[%s1416_s27 + $0x18] sm:$0xff]  ;;  %v273_v5 = vld [vmem:[%s1416_s27 + $0x20] sm:$0xff]  ;;  %v1430_v7 = vld [vmem:[%s1416_s27 + $0x88] sm:$0xff]  ;;  %v1258_v8 = vpack.c.bf16 %v270_v2, %v269_v1  ;;  %1298 = sst [smem:[#allocation2 + $0x1]] (%p1305_p5), %s1359_s12  ;;  %s1000_s13 = sld [smem:[#allocation2]] }
  0x12   : > { %1209 = vmatmul.mubr.msk.f32.vlgmr.msra.gmra.mrb[0].mxu0 %vm336_vm1, %v270_v2  ;;  %v1427_v6 = vld [vmem:[%s1416_s27 + $0x80] sm:$0xff]  ;;  %v1436_v10 = vld [vmem:[%s1416_s27 + $0x90] sm:$0xff]  ;;  %v1439_v11 = vld [vmem:[%s1416_s27 + $0x98] sm:$0xff]  ;;  %v1262_v17 = vpack.c.bf16 %v272_v4, %v271_v3  ;;  %1299 = sst [smem:[#allocation2 + $0x2]] (%p1305_p5), %s1359_s12  ;;  %s1131_s14 = sld [smem:[#allocation2 + $0x1]] }
  0x13   : > { %1211 = vmatprep.mubr.msk.f32.mxu0 %vm336_vm1, %v271_v3  ;;  %v1256_v9 = vpack.c.bf16 %v1430_v7, %v1427_v6  ;;  %v274_v12 = vld [vmem:[%s1416_s27 + $0x28] sm:$0xff]  ;;  %v1260_v13 = vpack.c.bf16 %v1439_v11, %v1436_v10  ;;  %v1446_v14 = vld [vmem:[%s1416_s27 + $0xa0] sm:$0xff]  ;;  %v275_v16 = vld [vmem:[%s1416_s27 + $0x30] sm:$0xff]  ;;  %1300 = sst [smem:[#allocation2 + $0x3]] (%p1305_p5), %s1359_s12  ;;  %s1132_s15 = sld [smem:[#allocation2 + $0x2]] }
  0x14   : > { %v1449_v15 = vld [vmem:[%s1416_s27 + $0xa8] sm:$0xff]  ;;  %v1458_v19 = vld [vmem:[%s249_s6] sm:$0xff]  ;;  %v276_v20 = vld [vmem:[%s1416_s27 + $0x38] sm:$0xff]  ;;  %v1266_v25 = vpack.c.bf16 %v274_v12, %v273_v5  ;;  %s1133_s20 = sld [smem:[#allocation2 + $0x3]]  ;;  %p1338_p9 = pneg %p1337_p8 }
  0x15   : > { %1257 = vmatprep.subr.bf16.mxu1 %v1256_v9  ;;  %v1264_v18 = vpack.c.bf16 %v1449_v15, %v1446_v14  ;;  %v291_v21 = vld [vmem:[%s1416_s27 + $0xb0] sm:$0xff]  ;;  %v292_v22 = vld [vmem:[%s1416_s27 + $0xb8] sm:$0xff]  ;;  %v916_v23 = vcombine.high %v1458_v19, %v1458_v19  ;;  %v277_v24 = vld [vmem:[%s1416_s27 + $0x40] sm:$0xff]  ;;  %v1270_v31 = vpack.c.bf16 %v276_v20, %v275_v16  ;;  %v826_v51 = vmul.f32 %v1458_v19, %v1458_v19 }
  0x16   : > { %1212 = vmatmul.mubr.msk.f32.gmra.mrb[2].mxu0 %vm336_vm1, %v272_v4  ;;  %1259 = vmatpush3.bf16.msra.mxu1 %v1258_v8  ;;  %v1268_v26 = vpack.c.bf16 %v292_v22, %v291_v21  ;;  %v278_v27 = vld [vmem:[%s1416_s27 + $0x48] sm:$0xff]  ;;  %v293_v28 = vld [vmem:[%s1416_s27 + $0xc0] sm:$0xff]  ;;  %v279_v30 = vld [vmem:[%s1416_s27 + $0x50] sm:$0xff]  ;;  %p1343_p11 = pnand %p1341_p10, %p1338_p9 }
  0x17   : > { %1214 = vmatprep.mubr.msk.f32.mxu0 %vm336_vm1, %v273_v5  ;;  %1261 = vmatprep.subr.bf16.mxu1 %v1260_v13  ;;  %v294_v29 = vld [vmem:[%s1416_s27 + $0xc8] sm:$0xff]  ;;  %v280_v33 = vld [vmem:[%s1416_s27 + $0x58] sm:$0xff]  ;;  %v295_v34 = vld [vmem:[%s1416_s27 + $0xd0] sm:$0xff]  ;;  %v1274_v37 = vpack.c.bf16 %v278_v27, %v277_v24  ;;  %v827_v52 = vadd.f32 4.9e-13, %v826_v51  ;;  %v868_v4 = vcombine.high %v826_v51, %v826_v51  ;;  %v870_v5 = vsel %vm433_vm0, %v826_v51, 0.0 }
  0x18   : > { %982 = vmatprep.mubr.f32.mxu1 %v916_v23  ;;  %v1272_v32 = vpack.c.bf16 %v294_v29, %v293_v28  ;;  %v296_v35 = vld [vmem:[%s1416_s27 + $0xd8] sm:$0xff]  ;;  %v281_v36 = vld [vmem:[%s1416_s27 + $0x60] sm:$0xff]  ;;  %v282_v39 = vld [vmem:[%s1416_s27 + $0x68] sm:$0xff]  ;;  %v1278_v43 = vpack.c.bf16 %v280_v33, %v279_v30  ;;  %v871_v8 = vrot.slane %v870_v5, 4 }
  0x19   : > { %v1276_v38 = vpack.c.bf16 %v296_v35, %v295_v34  ;;  %v297_v40 = vld [vmem:[%s1416_s27 + $0xe0] sm:$0xff]  ;;  %v298_v41 = vld [vmem:[%s1416_s27 + $0xe8] sm:$0xff]  ;;  %v283_v42 = vld [vmem:[%s1416_s27 + $0x70] sm:$0xff]  ;;  %v1282_v48 = vpack.c.bf16 %v282_v39, %v281_v36  ;;  %1319 = vrsqrt.f32 %v827_v52  ;;  %vm830_vm2 = vcmp.eq.f32.partialorder %v827_v52, inf }
  0x1a   : > { %1215 = vmatmul.mubr.msk.f32.gmra.mrb[4].mxu0 %vm336_vm1, %v274_v12  ;;  %1263 = vmatpush3.bf16.msra.mxu1 %v1262_v17  ;;  %v1280_v44 = vpack.c.bf16 %v298_v41, %v297_v40  ;;  %v284_v45 = vld [vmem:[%s1416_s27 + $0x78] sm:$0xff]  ;;  %v299_v46 = vld [vmem:[%s1416_s27 + $0xf0] sm:$0xff]  ;;  %v833_v55 = vand.u32 2147483648, %v827_v52  ;;  %vm832_vm3 = vcmp.eq.f32.partialorder %v827_v52, 0.0  ;;  %v872_v17 = vadd.f32 %v871_v8, %v870_v5 }
  0x1b   : > { %1217 = vmatprep.mubr.msk.f32.mxu0 %vm336_vm1, %v275_v16  ;;  %1265 = vmatprep.subr.bf16.mxu1 %v1264_v18  ;;  %v300_v47 = vld [vmem:[%s1416_s27 + $0xf8] sm:$0xff]  ;;  %v1286_v50 = vpack.c.bf16 %v284_v45, %v283_v42 }
  0x1c   : > { %v1284_v49 = vpack.c.bf16 %v300_v47, %v299_v46 }
  0x1e   : > { %1218 = vmatmul.mubr.msk.f32.gmra.mrb[6].mxu0 %vm336_vm1, %v276_v20  ;;  %1267 = vmatpush3.bf16.msra.mxu1 %v1266_v25 }
  0x1f   : > { %1220 = vmatprep.mubr.msk.f32.mxu0 %vm336_vm1, %v277_v24  ;;  %1269 = vmatprep.subr.bf16.mxu1 %v1268_v26 }
  0x22   : > { %1221 = vmatmul.mubr.msk.f32.gmra.mrb[8].mxu0 %vm336_vm1, %v278_v27  ;;  %1271 = vmatpush3.bf16.msra.mxu1 %v1270_v31 }
  0x23   : > { %1223 = vmatprep.mubr.msk.f32.mxu0 %vm336_vm1, %v279_v30  ;;  %1273 = vmatprep.subr.bf16.mxu1 %v1272_v32  ;;  %v1320_v53 = vpop.eup %1319 }
  0x24   : > { %v829_v54 = vmul.f32 %v1320_v53, %v827_v52 }
  0x26   : > { %1224 = vmatmul.mubr.msk.f32.gmra.mrb[10].mxu0 %vm336_vm1, %v280_v33  ;;  %1275 = vmatpush3.bf16.msra.mxu1 %v1274_v37  ;;  %v831_v56 = vsel %vm830_vm2, %v827_v52, %v829_v54 }
  0x27   : > { %1226 = vmatprep.mubr.msk.f32.mxu0 %vm336_vm1, %v281_v36  ;;  %1277 = vmatprep.subr.bf16.mxu1 %v1276_v38  ;;  %v834_v57 = vsel %vm832_vm3, %v833_v55, %v831_v56 }
  0x28   : > { %1321 = vrsqrt.f32 %v834_v57  ;;  %vm837_vm4 = vcmp.eq.f32.partialorder %v834_v57, inf  ;;  %v840_v60 = vand.u32 2147483648, %v834_v57  ;;  %vm839_vm5 = vcmp.eq.f32.partialorder %v834_v57, 0.0 }
  0x2a   : > { %1227 = vmatmul.mubr.msk.f32.gmra.mrb[12].mxu0 %vm336_vm1, %v282_v39  ;;  %1279 = vmatpush3.bf16.msra.mxu1 %v1278_v43 }
  0x2b   : > { %1229 = vmatprep.mubr.msk.f32.mxu0 %vm336_vm1, %v283_v42  ;;  %1281 = vmatprep.subr.bf16.mxu1 %v1280_v44 }
  0x2e   : > { %1230 = vmatmul.mubr.msk.f32.gmra.mrb[14].mxu0 %vm336_vm1, %v284_v45  ;;  %1283 = vmatpush3.bf16.msra.mxu1 %v1282_v48 }
  0x2f   : > { %1232 = vmatprep.mubr.msk.f32.mxu0 %vm336_vm1, %v1427_v6  ;;  %1285 = vmatprep.subr.bf16.mxu1 %v1284_v49 }
  0x32   : > { %1233 = vmatmul.mubr.msk.f32.gmra.mrb[16].mxu0 %vm336_vm1, %v1430_v7  ;;  %1287 = vmatpush3.bf16.msra.mxu1 %v1286_v50  ;;  %v1322_v58 = vpop.eup %1321 }
  0x33   : > { %1235 = vmatprep.mubr.msk.f32.mxu0 %vm336_vm1, %v1436_v10  ;;  %v836_v59 = vmul.f32 %v1322_v58, %v834_v57  ;;  %v304_v58 = vld [vmem:[%s1525_s9] sm:$0xff] }
  0x35   : > { %983 = vmatmul.mubr.f32.vlgmr.msra.gmra.mrb[0].mxu1 %v1458_v19  ;;  %v838_v61 = vsel %vm837_vm4, %v834_v57, %v836_v59  ;;  %v305_v57 = vld [vmem:[%s1525_s9 + $0x8] sm:$0xff] }
  0x36   : > { %1236 = vmatmul.mubr.msk.f32.gmra.mrb[18].mxu0 %vm336_vm1, %v1439_v11  ;;  %v841_v62 = vsel %vm839_vm5, %v840_v60, %v838_v61  ;;  %v877_v11 = vsel %vm433_vm0, %v868_v4, 0.0 }
  0x37   : > { %1238 = vmatprep.mubr.msk.f32.mxu0 %vm336_vm1, %v1446_v14  ;;  %1323 = vrsqrt.f32 %v841_v62  ;;  %vm844_vm6 = vcmp.eq.f32.partialorder %v841_v62, inf  ;;  %v847_v1 = vand.u32 2147483648, %v841_v62  ;;  %vm846_vm7 = vcmp.eq.f32.partialorder %v841_v62, 0.0 }
  0x38   : > { %v878_v14 = vrot.slane %v877_v11, 4 }
  0x3a   : > { %1239 = vmatmul.mubr.msk.f32.gmra.mrb[20].mxu0 %vm336_vm1, %v1449_v15  ;;  %v879_v18 = vadd.f32 %v878_v14, %v877_v11  ;;  %v308_v11 = vld [vmem:[%s1525_s9 + $0x20] sm:$0xff] }
  0x3b   : > { %1241 = vmatprep.mubr.msk.f32.mxu0 %vm336_vm1, %v291_v21 }
  0x3c   : > { %v880_v23 = vrot.slane %v879_v18, 2 }
  0x3e   : > { %1242 = vmatmul.mubr.msk.f32.gmra.mrb[22].mxu0 %vm336_vm1, %v292_v22  ;;  %v873_v22 = vrot.slane %v872_v17, 2  ;;  %v881_v27 = vadd.f32 %v880_v23, %v879_v18 }
  0x3f   : > { %1244 = vmatprep.mubr.msk.f32.mxu0 %vm336_vm1, %v293_v28 }
  0x40   : > { %v874_v26 = vadd.f32 %v873_v22, %v872_v17  ;;  %v882_v31 = vrot.slane %v881_v27, 1  ;;  %v310_v22 = vld [vmem:[%s1525_s9 + $0x30] sm:$0xff] }
  0x41   : > { %v1324_v63 = vpop.eup %1323 }
  0x42   : > { %1245 = vmatmul.mubr.msk.f32.gmra.mrb[24].mxu0 %vm336_vm1, %v294_v29  ;;  %v843_v0 = vmul.f32 %v1324_v63, %v841_v62  ;;  %v875_v30 = vrot.slane %v874_v26, 1  ;;  %v307_v63 = vld [vmem:[%s1525_s9 + $0x18] sm:$0xff] }
  0x43   : > { %1247 = vmatprep.mubr.msk.f32.mxu0 %vm336_vm1, %v295_v34 }
  0x44   : > { %v845_v2 = vsel %vm844_vm6, %v841_v62, %v843_v0  ;;  %v876_v34 = vadd.f32 %v875_v30, %v874_v26 }
  0x45   : > { %v848_v3 = vsel %vm846_vm7, %v847_v1, %v845_v2  ;;  %v306_v1 = vld [vmem:[%s1525_s9 + $0x10] sm:$0xff] }
  0x46   : > { %1248 = vmatmul.mubr.msk.f32.gmra.mrb[26].mxu0 %vm336_vm1, %v296_v35  ;;  %v1130_v6 = vadd.f32 -0.028925076, %v848_v3  ;;  %v883_v35 = vadd.f32 %v882_v31, %v881_v27  ;;  %v892_v38 = vadd.f32 0.01, %v876_v34  ;;  %v312_v34 = vld [vmem:[%s1525_s9 + $0x40] sm:$0xff] }
  0x47   : > { %1250 = vmatprep.mubr.msk.f32.mxu0 %vm336_vm1, %v297_v40 }
  0x48   : > { %v851_v7 = vcombine.high %v1130_v6, %v1130_v6  ;;  %v853_v9 = vsel %vm433_vm0, %v1130_v6, 0.0  ;;  %v893_v39 = vadd.f32 0.01, %v883_v35 }
  0x49   : > { %v854_v12 = vrot.slane %v853_v9, 4 }
  0x4a   : > { %1251 = vmatmul.mubr.msk.f32.gmra.mrb[28].mxu0 %vm336_vm1, %v298_v41  ;;  %v860_v10 = vsel %vm433_vm0, %v851_v7, 0.0 }
  0x4b   : > { %1253 = vmatprep.mubr.msk.f32.mxu0 %vm336_vm1, %v299_v46  ;;  %v861_v13 = vrot.slane %v860_v10, 4  ;;  %v855_v15 = vadd.f32 %v854_v12, %v853_v9  ;;  %v309_v9 = vld [vmem:[%s1525_s9 + $0x28] sm:$0xff] }
  0x4d   : > { %v862_v16 = vadd.f32 %v861_v13, %v860_v10  ;;  %v856_v20 = vrot.slane %v855_v15, 2 }
  0x4e   : > { %1254 = vmatmul.mubr.msk.f32.gmra.mrb[30].mxu0 %vm336_vm1, %v300_v47 }
  0x4f   : > { %v863_v21 = vrot.slane %v862_v16, 2  ;;  %v857_v24 = vadd.f32 %v856_v20, %v855_v15  ;;  %v311_v20 = vld [vmem:[%s1525_s9 + $0x38] sm:$0xff] }
  0x51   : > { %v864_v25 = vadd.f32 %v863_v21, %v862_v16  ;;  %v858_v28 = vrot.slane %v857_v24, 1 }
  0x53   : > { %v865_v29 = vrot.slane %v864_v25, 1  ;;  %v859_v32 = vadd.f32 %v858_v28, %v857_v24 }
  0x55   : > { %v866_v33 = vadd.f32 %v865_v29, %v864_v25  ;;  %v884_v36 = vadd.f32 0.23403473, %v859_v32  ;;  %v313_v32 = vld [vmem:[%s1525_s9 + $0x48] sm:$0xff] }
  0x57   : > { %v885_v37 = vadd.f32 0.23403473, %v866_v33  ;;  %1325 = vlog2.f32 %v884_v36 }
  0x59   : > { %1327 = vlog2.f32 %v885_v37 }
  0x5a   : > { %1329 = vlog2.f32 %v892_v38 }
  0x5b   : > { %1331 = vlog2.f32 %v893_v39 }
  0x61   : > { %v1326_v40 = vpop.eup %1325 }
  0x62   : > { %v887_v42 = vmul.f32 0.6931472, %v1326_v40 }
  0x63   : > { %v1328_v41 = vpop.eup %1327 }
  0x64   : > { %v1330_v43 = vpop.eup %1329  ;;  %v889_v44 = vmul.f32 0.6931472, %v1328_v41  ;;  %v890_v46 = vmul.f32 4.0, %v887_v42 }
  0x65   : > { %v1332_v45 = vpop.eup %1331  ;;  %v895_v47 = vmul.f32 0.6931472, %v1330_v43 }
  0x66   : > { %v891_v48 = vmul.f32 4.0, %v889_v44  ;;  %v897_v49 = vmul.f32 0.6931472, %v1332_v45  ;;  %v315_v44 = vld [vmem:[%s1525_s9 + $0x58] sm:$0xff] }
  0x67   : > { %v898_v50 = vmul.f32 0.5, %v895_v47 }
  0x68   : > { %v899_v51 = vmul.f32 0.5, %v897_v49 }
  0x69   : > { %v900_v52 = vsub.f32 %v890_v46, %v898_v50  ;;  %v314_v46 = vld [vmem:[%s1525_s9 + $0x50] sm:$0xff] }
  0x6a   : > { %v901_v53 = vsub.f32 %v891_v48, %v899_v51 }
  0x6b   : > { %v903_v54 = vsel %vm902_vm8, %v900_v52, 0.0 }
  0x6c   : > { %v904_v55 = vsel %vm902_vm8, %v901_v53, 0.0 }
  0x6d   : > { %v905_v56 = vadd.f32 %v904_v55, %v903_v54 }
  0x6f   : > { %906 = vadd.xlane.f32.xlu1 %v905_v56  ;;  %v317_v56 = vld [vmem:[%s1525_s9 + $0x68] sm:$0xff] }
  0xe5   : > { %v1210_v59 = vpop.f32.mrb[0].mxu0 }
  0xe6   : > { %v663_v60 = vsub.f32 %v1210_v59, %v305_v57  ;;  %v503_v61 = vpop.f32.mrb[1].mxu0 }
  0xe7   : > { %v662_v62 = vsub.f32 %v503_v61, %v304_v58  ;;  %v316_v58 = vld [vmem:[%s1525_s9 + $0x60] sm:$0xff] }
  0xe8   : > { %v695_v0 = vmul.f32 %v663_v60, %v663_v60 }
  0xe9   : > { %v694_v2 = vmul.f32 %v662_v62, %v662_v62  ;;  %v1213_v3 = vpop.f32.mrb[2].mxu0 }
  0xea   : > { %v728_v4 = vsel %vm726_vm9, %v695_v0, 0.0  ;;  %v665_v5 = vsub.f32 %v1213_v3, %v307_v63  ;;  %v513_v6 = vpop.f32.mrb[3].mxu0 }
  0xeb   : > { %v727_v7 = vsel %vm726_vm9, %v694_v2, 0.0  ;;  %v664_v8 = vsub.f32 %v513_v6, %v306_v1 }
  0xec   : > { %v729_v10 = vadd.f32 %v728_v4, %v727_v7  ;;  %v697_v12 = vmul.f32 %v665_v5, %v665_v5  ;;  %v319_v4 = vld [vmem:[%s1525_s9 + $0x78] sm:$0xff]  ;;  %v1554_v5 = vsub.f32 0.0, %v1458_v19  ;;  %v318_v7 = vld [vmem:[%s1525_s9 + $0x70] sm:$0xff] }
  0xed   : > { %v696_v13 = vmul.f32 %v664_v8, %v664_v8  ;;  %v1216_v14 = vpop.f32.mrb[4].mxu0 }
  0xee   : > { %v667_v15 = vsub.f32 %v1216_v14, %v309_v9  ;;  %v523_v16 = vpop.f32.mrb[5].mxu0  ;;  %v732_v23 = vsel %vm726_vm9, %v697_v12, 0.0  ;;  %v801_v19 = vsub.f32 0.0, %v1554_v5  ;;  %vm809_vm11 = vcmp.le.f32.partialorder %v1554_v5, -0.0004 }
  0xef   : > { %v730_v17 = vsel %vm726_vm9, %v696_v13, 0.0  ;;  %v666_v18 = vsub.f32 %v523_v16, %v308_v11 }
  0xf0   : > { %v731_v21 = vadd.f32 %v730_v17, %v729_v10  ;;  %v699_v24 = vmul.f32 %v667_v15, %v667_v15  ;;  %v321_v17 = vld [vmem:[%s1525_s9 + $0x88] sm:$0xff] }
  0xf1   : > { %v698_v25 = vmul.f32 %v666_v18, %v666_v18  ;;  %v1219_v26 = vpop.f32.mrb[6].mxu0 }
  0xf2   : > { %v733_v27 = vadd.f32 %v732_v23, %v731_v21  ;;  %v669_v28 = vsub.f32 %v1219_v26, %v311_v20  ;;  %v533_v29 = vpop.f32.mrb[7].mxu0  ;;  %v736_v35 = vsel %vm726_vm9, %v699_v24, 0.0  ;;  %v320_v20 = vld [vmem:[%s1525_s9 + $0x80] sm:$0xff] }
  0xf3   : > { %v734_v30 = vsel %vm726_vm9, %v698_v25, 0.0  ;;  %v668_v31 = vsub.f32 %v533_v29, %v310_v22 }
  0xf4   : > { %v735_v33 = vadd.f32 %v734_v30, %v733_v27  ;;  %v701_v36 = vmul.f32 %v669_v28, %v669_v28  ;;  %v323_v30 = vld [vmem:[%s1525_s9 + $0x98] sm:$0xff] }
  0xf5   : > { %v700_v37 = vmul.f32 %v668_v31, %v668_v31  ;;  %v1222_v38 = vpop.f32.mrb[8].mxu0 }
  0xf6   : > { %v737_v39 = vadd.f32 %v736_v35, %v735_v33  ;;  %v671_v40 = vsub.f32 %v1222_v38, %v313_v32  ;;  %v543_v41 = vpop.f32.mrb[9].mxu0  ;;  %v740_v47 = vsel %vm726_vm9, %v701_v36, 0.0  ;;  %v322_v32 = vld [vmem:[%s1525_s9 + $0x90] sm:$0xff]  ;;  %v802_v33 = vmax.f32 %v801_v19, 1e-30 }
  0xf7   : > { %v738_v42 = vsel %vm726_vm9, %v700_v37, 0.0  ;;  %v670_v43 = vsub.f32 %v543_v41, %v312_v34 }
  0xf8   : > { %v739_v45 = vadd.f32 %v738_v42, %v737_v39  ;;  %v703_v48 = vmul.f32 %v671_v40, %v671_v40  ;;  %1333 = vlog2.f32 %v802_v33 }
  0xf9   : > { %v702_v49 = vmul.f32 %v670_v43, %v670_v43  ;;  %v1225_v50 = vpop.f32.mrb[10].mxu0  ;;  %v325_v43 = vld [vmem:[%s1525_s9 + $0xa8] sm:$0xff] }
  0xfa   : > { %v741_v51 = vadd.f32 %v740_v47, %v739_v45  ;;  %v673_v52 = vsub.f32 %v1225_v50, %v315_v44  ;;  %v553_v53 = vpop.f32.mrb[11].mxu0  ;;  %v744_v59 = vsel %vm726_vm9, %v703_v48, 0.0  ;;  %v303_v48 = vld [vmem:[%s1622_s3] sm:$0xf] }
  0xfb   : > { %v742_v54 = vsel %vm726_vm9, %v702_v49, 0.0  ;;  %v672_v55 = vsub.f32 %v553_v53, %v314_v46  ;;  %v324_v46 = vld [vmem:[%s1525_s9 + $0xa0] sm:$0xff] }
  0xfc   : > { %v743_v57 = vadd.f32 %v742_v54, %v741_v51  ;;  %v705_v60 = vmul.f32 %v673_v52, %v673_v52 }
  0xfd   : > { %v704_v61 = vmul.f32 %v672_v55, %v672_v55  ;;  %v1228_v62 = vpop.f32.mrb[12].mxu0 }
  0xfe   : > { %v745_v63 = vadd.f32 %v744_v59, %v743_v57  ;;  %v675_v0 = vsub.f32 %v1228_v62, %v317_v56  ;;  %v563_v1 = vpop.f32.mrb[13].mxu0  ;;  %v748_v8 = vsel %vm726_vm9, %v705_v60, 0.0  ;;  %v327_v59 = vld [vmem:[%s1525_s9 + $0xb8] sm:$0xff]  ;;  %v326_v62 = vld [vmem:[%s1525_s9 + $0xb0] sm:$0xff] }
  0xff   : > { %v746_v2 = vsel %vm726_vm9, %v704_v61, 0.0  ;;  %v674_v3 = vsub.f32 %v563_v1, %v316_v58 }
 0x100   : > { %v747_v6 = vadd.f32 %v746_v2, %v745_v63  ;;  %v707_v9 = vmul.f32 %v675_v0, %v675_v0 }
 0x101   : > { %v706_v10 = vmul.f32 %v674_v3, %v674_v3  ;;  %v1231_v11 = vpop.f32.mrb[14].mxu0 }
 0x102   : > { %v749_v12 = vadd.f32 %v748_v8, %v747_v6  ;;  %v677_v13 = vsub.f32 %v1231_v11, %v319_v4  ;;  %v573_v14 = vpop.f32.mrb[15].mxu0  ;;  %v752_v21 = vsel %vm726_vm9, %v707_v9, 0.0 }
 0x103   : > { %v750_v15 = vsel %vm726_vm9, %v706_v10, 0.0  ;;  %v676_v16 = vsub.f32 %v573_v14, %v318_v7  ;;  %v329_v10 = vld [vmem:[%s1525_s9 + $0xc8] sm:$0xff] }
 0x104   : > { %v751_v18 = vadd.f32 %v750_v15, %v749_v12  ;;  %v709_v22 = vmul.f32 %v677_v13, %v677_v13  ;;  %v328_v12 = vld [vmem:[%s1525_s9 + $0xc0] sm:$0xff] }
 0x105   : > { %v708_v23 = vmul.f32 %v676_v16, %v676_v16  ;;  %v1234_v24 = vpop.f32.mrb[16].mxu0 }
 0x106   : > { %v753_v25 = vadd.f32 %v752_v21, %v751_v18  ;;  %v679_v26 = vsub.f32 %v1234_v24, %v321_v17  ;;  %v583_v27 = vpop.f32.mrb[17].mxu0  ;;  %v756_v34 = vsel %vm726_vm9, %v709_v22, 0.0  ;;  %v1334_v17 = vpop.eup %1333  ;;  %v806_v21 = vmul.f32 50.0, %v1554_v5  ;;  %v331_v24 = vld [vmem:[%s1525_s9 + $0xd8] sm:$0xff] }
 0x107   : > { %v754_v28 = vsel %vm726_vm9, %v708_v23, 0.0  ;;  %v678_v29 = vsub.f32 %v583_v27, %v320_v20 }
 0x108   : > { %v755_v31 = vadd.f32 %v754_v28, %v753_v25  ;;  %v711_v35 = vmul.f32 %v679_v26, %v679_v26  ;;  %v1203_v44 = vpop.f32.mrb[0].mxu1  ;;  %v330_v26 = vld [vmem:[%s1525_s9 + $0xd0] sm:$0xff] }
 0x109   : > { %v710_v36 = vmul.f32 %v678_v29, %v678_v29  ;;  %v1237_v37 = vpop.f32.mrb[18].mxu0  ;;  %v1204_v47 = vpop.f32.mrb[1].mxu1 }
 0x10a   : > { %v757_v38 = vadd.f32 %v756_v34, %v755_v31  ;;  %v681_v39 = vsub.f32 %v1237_v37, %v323_v30  ;;  %v593_v40 = vpop.f32.mrb[19].mxu0  ;;  %v760_v49 = vsel %vm726_vm9, %v711_v35, 0.0  ;;  %v1205_v53 = vadd.f32 %v1204_v47, %v1203_v44 }
 0x10b   : > { %v758_v41 = vsel %vm726_vm9, %v710_v36, 0.0  ;;  %v680_v42 = vsub.f32 %v593_v40, %v322_v32  ;;  %v804_v34 = vmul.f32 0.6931472, %v1334_v17  ;;  %v1129_v35 = vadd.f32 0.15648092, %v806_v21  ;;  %v332_v40 = vld [vmem:[%s1525_s9 + $0xe0] sm:$0xff] }
 0x10c   : > { %v759_v45 = vadd.f32 %v758_v41, %v757_v38  ;;  %v713_v50 = vmul.f32 %v681_v39, %v681_v39  ;;  %v988_v60 = vmul.f32 %v1205_v53, %v303_v48  ;;  %v333_v38 = vld [vmem:[%s1525_s9 + $0xe8] sm:$0xff] }
 0x10d   : > { %v712_v51 = vmul.f32 %v680_v42, %v680_v42  ;;  %v1240_v52 = vpop.f32.mrb[20].mxu0  ;;  %v805_v48 = vmul.f32 -0.02, %v804_v34 }
 0x10e   : > { %v761_v54 = vadd.f32 %v760_v49, %v759_v45  ;;  %v683_v55 = vsub.f32 %v1240_v52, %v325_v43  ;;  %v603_v56 = vpop.f32.mrb[21].mxu0  ;;  %v764_v63 = vsel %vm726_vm9, %v713_v50, 0.0  ;;  %v990_v3 = vsel %vm989_vm10, %v988_v60, 0.0  ;;  %v335_v52 = vld [vmem:[%s1525_s9 + $0xf8] sm:$0xff] }
 0x10f   : > { %v762_v57 = vsel %vm726_vm9, %v712_v51, 0.0  ;;  %v682_v58 = vsub.f32 %v603_v56, %v324_v46  ;;  %991 = vadd.xlane.f32.xlu1 %v990_v3  ;;  %v808_v49 = vadd.f32 0.02, %v1129_v35 }
 0x110   : > { %v763_v61 = vadd.f32 %v762_v57, %v761_v54  ;;  %v715_v0 = vmul.f32 %v683_v55, %v683_v55  ;;  %v334_v54 = vld [vmem:[%s1525_s9 + $0xf0] sm:$0xff] }
 0x111   : > { %v714_v1 = vmul.f32 %v682_v58, %v682_v58  ;;  %v1243_v2 = vpop.f32.mrb[22].mxu0 }
 0x112   : > { %v765_v4 = vadd.f32 %v764_v63, %v763_v61  ;;  %v685_v6 = vsub.f32 %v1243_v2, %v327_v59  ;;  %v613_v7 = vpop.f32.mrb[23].mxu0  ;;  %v768_v13 = vsel %vm726_vm9, %v715_v0, 0.0 }
 0x113   : > { %v766_v8 = vsel %vm726_vm9, %v714_v1, 0.0  ;;  %v684_v9 = vsub.f32 %v613_v7, %v326_v62  ;;  %v810_v62 = vsel %vm809_vm11, %v805_v48, %v808_v49 }
 0x114   : > { %v767_v11 = vadd.f32 %v766_v8, %v765_v4  ;;  %v717_v14 = vmul.f32 %v685_v6, %v685_v6  ;;  %v812_v4 = vcombine.high %v810_v62, %v810_v62 }
 0x115   : > { %v716_v15 = vmul.f32 %v684_v9, %v684_v9  ;;  %v1246_v16 = vpop.f32.mrb[24].mxu0 }
 0x116   : > { %v769_v18 = vadd.f32 %v768_v13, %v767_v11  ;;  %v687_v20 = vsub.f32 %v1246_v16, %v329_v10  ;;  %v623_v19 = vpop.f32.mrb[25].mxu0  ;;  %v772_v27 = vsel %vm726_vm9, %v717_v14, 0.0  ;;  %v814_v10 = vsel %vm433_vm0, %v810_v62, 0.0  ;;  %v907_v14 = vpop.xlane.xlu1 %906 }
 0x117   : > { %v770_v22 = vsel %vm726_vm9, %v716_v15, 0.0  ;;  %v686_v23 = vsub.f32 %v623_v19, %v328_v12  ;;  %v815_v11 = vsel %vm433_vm0, %v812_v4, 0.0  ;;  %v908_v16 = vrot.slane %v907_v14, 4 }
 0x118   : > { %v771_v25 = vadd.f32 %v770_v22, %v769_v18  ;;  %v719_v28 = vmul.f32 %v687_v20, %v687_v20  ;;  %v816_v13 = vadd.f32 %v815_v11, %v814_v10 }
 0x119   : > { %v718_v29 = vmul.f32 %v686_v23, %v686_v23  ;;  %v1249_v30 = vpop.f32.mrb[26].mxu0  ;;  %v909_v18 = vadd.f32 %v908_v16, %v907_v14 }
 0x11a   : > { %v773_v31 = vadd.f32 %v772_v27, %v771_v25  ;;  %v689_v32 = vsub.f32 %v1249_v30, %v331_v24  ;;  %v633_v33 = vpop.f32.mrb[27].mxu0  ;;  %v776_v41 = vsel %vm726_vm9, %v719_v28, 0.0 }
 0x11b   : > { %v774_v36 = vsel %vm726_vm9, %v718_v29, 0.0  ;;  %v688_v37 = vsub.f32 %v633_v33, %v330_v26  ;;  %v910_v23 = vrot.slane %v909_v18, 2 }
 0x11c   : > { %v775_v39 = vadd.f32 %v774_v36, %v773_v31  ;;  %v721_v42 = vmul.f32 %v689_v32, %v689_v32 }
 0x11d   : > { %v720_v43 = vmul.f32 %v688_v37, %v688_v37  ;;  %v1252_v44 = vpop.f32.mrb[28].mxu0  ;;  %v911_v30 = vadd.f32 %v910_v23, %v909_v18 }
 0x11e   : > { %v777_v45 = vadd.f32 %v776_v41, %v775_v39  ;;  %v691_v46 = vsub.f32 %v1252_v44, %v333_v38  ;;  %v643_v47 = vpop.f32.mrb[29].mxu0  ;;  %v780_v55 = vsel %vm726_vm9, %v721_v42, 0.0 }
 0x11f   : > { %v778_v50 = vsel %vm726_vm9, %v720_v43, 0.0  ;;  %v690_v51 = vsub.f32 %v643_v47, %v332_v40  ;;  %v912_v36 = vrot.slane %v911_v30, 1 }
 0x120   : > { %v779_v53 = vadd.f32 %v778_v50, %v777_v45  ;;  %v723_v56 = vmul.f32 %v691_v46, %v691_v46 }
 0x121   : > { %v722_v57 = vmul.f32 %v690_v51, %v690_v51  ;;  %v1255_v58 = vpop.f32.mrb[30].mxu0  ;;  %v913_v40 = vadd.f32 %v912_v36, %v911_v30 }
 0x122   : > { %v781_v59 = vadd.f32 %v780_v55, %v779_v53  ;;  %v693_v60 = vsub.f32 %v1255_v58, %v335_v52  ;;  %v653_v61 = vpop.f32.mrb[31].mxu0  ;;  %v784_v2 = vsel %vm726_vm9, %v723_v56, 0.0 }
 0x123   : > { %v782_v63 = vsel %vm726_vm9, %v722_v57, 0.0  ;;  %v692_v0 = vsub.f32 %v653_v61, %v334_v54 }
 0x124   : > { %v783_v1 = vadd.f32 %v782_v63, %v781_v59  ;;  %v725_v3 = vmul.f32 %v693_v60, %v693_v60 }
 0x125   : > { %v724_v5 = vmul.f32 %v692_v0, %v692_v0 }
 0x126   : > { %v785_v6 = vadd.f32 %v784_v2, %v783_v1  ;;  %v788_v9 = vsel %vm726_vm9, %v725_v3, 0.0 }
 0x127   : > { %v786_v7 = vsel %vm726_vm9, %v724_v5, 0.0 }
 0x128   : > { %v787_v8 = vadd.f32 %v786_v7, %v785_v6 }
 0x12a   : > { %v789_v12 = vadd.f32 %v788_v9, %v787_v8 }
 0x12c   : > { %790 = vadd.xlane.f32.xlu0 %v789_v12 }
 0x130   : > { %817 = vadd.xlane.f32.xlu0 %v816_v13 }
 0x19c   : > { %v992_v15 = vpop.xlane.xlu1 %991 }
 0x19d   : > { %v993_v17 = vrot.slane %v992_v15, 4 }
 0x19f   : > { %v994_v19 = vadd.f32 %v993_v17, %v992_v15 }
 0x1a1   : > { %v995_v25 = vrot.slane %v994_v19, 2 }
 0x1a3   : > { %v996_v31 = vadd.f32 %v995_v25, %v994_v19 }
 0x1a5   : > { %v997_v38 = vrot.slane %v996_v31, 1 }
 0x1a7   : > { %v998_v41 = vadd.f32 %v997_v38, %v996_v31 }
 0x1b9   : > { %v791_v20 = vpop.xlane.xlu0 %790 }
 0x1ba   : > { %v792_v21 = vrot.slane %v791_v20, 4 }
 0x1bc   : > { %v793_v22 = vadd.f32 %v792_v21, %v791_v20 }
 0x1bd   : > { %v818_v24 = vpop.xlane.xlu0 %817 }
 0x1be   : > { %v794_v26 = vrot.slane %v793_v22, 2  ;;  %v819_v27 = vrot.slane %v818_v24, 4 }
 0x1c0   : > { %v820_v28 = vadd.f32 %v819_v27, %v818_v24  ;;  %v795_v29 = vadd.f32 %v794_v26, %v793_v22 }
 0x1c2   : > { %v821_v32 = vrot.slane %v820_v28, 2  ;;  %v796_v33 = vrot.slane %v795_v29, 1 }
 0x1c4   : > { %v822_v34 = vadd.f32 %v821_v32, %v820_v28  ;;  %v797_v35 = vadd.f32 %v796_v33, %v795_v29 }
 0x1c6   : > { %1288 = vpush %v797_v35  ;;  %v823_v37 = vrot.slane %v822_v34, 1 }
 0x1c8   : > { %v824_v39 = vadd.f32 %v823_v37, %v822_v34 }
 0x1ca   : > { %1290 = vpush %v824_v39 }
 0x1cb   : > { %1292 = vpush %v913_v40 }
 0x1cc   : > { %1294 = vpush %v998_v41 }
 0x1f7   : > { %s1289_s16 = spop %1288 }
 0x1f8   : > { %s799_s17 = smul.f32 0.5, %s1289_s16 }
 0x1fa   : > { %s1001_s21 = sadd.f32 %s1000_s13, %s799_s17 }
 0x1fb   : > { %s1291_s22 = spop %1290 }
 0x1fc   : > { %1003 = sst [smem:[#allocation2]] %s1001_s21  ;;  %s1293_s23 = spop %1292 }
 0x1fd   : > { %s1005_s24 = sadd.f32 %s1291_s22, %s1131_s14  ;;  %s1295_s26 = spop %1294 }
 0x1fe   : > { %s1009_s25 = sadd.f32 %s1293_s23, %s1132_s15 }
 0x1ff   : > { %1007 = sst [smem:[#allocation2 + $0x1]] %s1005_s24 }
 0x200   : > { %1011 = sst [smem:[#allocation2 + $0x2]] %s1009_s25 }
 0x201   : > { %s1013_s27 = sadd.f32 %s1295_s26, %s1133_s20 }
 0x203   : > { %1015 = sst [smem:[#allocation2 + $0x3]] %s1013_s27 }
 0x204   : > { %1346 = shalt.err (!%p1343_p11)
}
 0x205   : > { %s1360_s10 = smov [#allocation2]  }
 0x206   : > { %1302 = dma.smem_to_hbm (%p1306_p6), %s1360_s10, 16, %s1624_s5, [#allocation3]  }
 0x207   : > { %1352 = dma.done.wait (%p1306_p6), [#allocation3], 16  }
 0x208   : > { %1354 = vsyncadd (%p1306_p6), [#allocation3], 4294967280 }
 0x209   : > { %1029 = sfence }
 0x20a PF: > { %s16_s18 = sadd.s32 1, %s1357_s18  }
 0x20b   : > { %p13_p12 = scmp.ge.s32.totalorder %s16_s18, 6  }
 0x20d   :  { %15 = sbr.rel (!%p13_p12) target bundleno = 1 (0x1), region = 85 }
 0x214   :  { %1035 = vsyncpa [#allocation3], 1 }
 0x215   :  { %1037 = vsyncpa [#allocation3 + $0x1], 1 }

</bundles_post_ra>
